<compile_context>
chip_gen: v7x
topology: tpu7x:2x2x1
jax: 0.10.0
libtpu: 0.0.40
codegen_flags: <defaults>
</compile_context>

<pallas_src>
import functools

import jax
import jax.numpy as jnp
from jax.experimental import pallas as pl
from jax.experimental.pallas import tpu as pltpu


def _policy_kernel(w_ref, b_ref, x_ref, o_ref):
    """Lane-dense policy head.

    w_ref: (OUT, IN) f32, SMEM (scalar reads)
    b_ref: (OUT,)    f32, SMEM
    x_ref: (IN, tb)  f32, VMEM  -- batch on the lane axis
    o_ref: (OUT, tb) f32, VMEM
    """
    OUT, IN = w_ref.shape

    # Linear layer as OUT*IN broadcast FMAs on the VPU.  The Python loops
    # unroll at trace time (IN=4, OUT=2 for CartPole).
    logits = []
    for o in range(OUT):
        acc = x_ref[0:1, :] * w_ref[o, 0]
        for k in range(1, IN):
            acc = acc + x_ref[k : k + 1, :] * w_ref[o, k]
        logits.append(acc + b_ref[o])

    if OUT == 2:
        # softmax over 2 classes == sigmoid of the logit difference; exact,
        # sums to 1, and avoids cross-sublane max/sum reductions.
        p0 = jax.nn.sigmoid(logits[0] - logits[1])
        o_ref[...] = jnp.concatenate([p0, 1.0 - p0], axis=0)
    else:
        l = jnp.concatenate(logits, axis=0)           # (OUT, tb)
        m = jnp.max(l, axis=0, keepdims=True)
        e = jnp.exp(l - m)
        o_ref[...] = e / jnp.sum(e, axis=0, keepdims=True)


def _forward_whole(xT, weight, bias):
    """Grid-less path: whole operands resident in VMEM, single kernel body."""
    _, B = xT.shape
    OUT = weight.shape[0]
    return pl.pallas_call(
        _policy_kernel,
        out_shape=jax.ShapeDtypeStruct((OUT, B), jnp.float32),
        in_specs=[
            pl.BlockSpec(memory_space=pltpu.MemorySpace.SMEM),   # weight
            pl.BlockSpec(memory_space=pltpu.MemorySpace.SMEM),   # bias
            pl.BlockSpec(memory_space=pltpu.MemorySpace.VMEM),   # xT
        ],
        out_specs=pl.BlockSpec(memory_space=pltpu.MemorySpace.VMEM),
    )(weight, bias, xT)


def _forward_tiled(xT, weight, bias, tb):
    """Batch-tiled path for large B: 1-D 'parallel' grid over the lane axis."""
    IN, B = xT.shape
    OUT = weight.shape[0]
    return pl.pallas_call(
        _policy_kernel,
        out_shape=jax.ShapeDtypeStruct((OUT, B), jnp.float32),
        grid=(pl.cdiv(B, tb),),
        in_specs=[
            pl.BlockSpec(memory_space=pltpu.MemorySpace.SMEM),   # weight
            pl.BlockSpec(memory_space=pltpu.MemorySpace.SMEM),   # bias
            pl.BlockSpec((IN, tb), lambda i: (0, i)),            # xT tile
        ],
        out_specs=pl.BlockSpec((OUT, tb), lambda i: (0, i)),
        compiler_params=pltpu.CompilerParams(
            dimension_semantics=("parallel",),   # megacore-shardable (v7x)
        ),
    )(weight, bias, xT)


@functools.partial(jax.jit, static_argnames=("batch_tile",))
def policy_network_forward(x, weight, bias, *, batch_tile=8192):
    """x: (B, IN) f32; weight: (OUT, IN) f32 (PyTorch layout); bias: (OUT,) f32.

    Returns softmax(x @ weight.T + bias) of shape (B, OUT).
    """
    B, _ = x.shape
    # Batch on the lane axis inside the kernel; transpose is cheap wrapper
    # layout plumbing (a few KiB..MB) vs. 32x lane-padding inflation otherwise.
    xT = jnp.transpose(x)                          # (IN, B)
    if B <= batch_tile:
        outT = _forward_whole(xT, weight, bias)    # (OUT, B)
    else:
        outT = _forward_tiled(xT, weight, bias, batch_tile)
    return jnp.transpose(outT)                     # (B, OUT)

    # TODO(synk): optional fusion of action sampling (prng + categorical over
    # 2 classes) into the same kernel to shave one launch per rollout step.


if __name__ == "__main__":
    # CartPole-v1: observation dim = 4, action count = 2
    INPUT_SIZE = 4
    OUTPUT_SIZE = 2
    BATCH = 8

    key = jax.random.PRNGKey(0)
    kx, kw, kb, kx2 = jax.random.split(key, 4)

    # Deterministic synthetic parameters (nn.Linear shapes: W=(out,in), b=(out,))
    bound = 1.0 / (INPUT_SIZE ** 0.5)
    weight = jax.random.uniform(
        kw, (OUTPUT_SIZE, INPUT_SIZE), jnp.float32, minval=-bound, maxval=bound
    )
    bias = jax.random.uniform(
        kb, (OUTPUT_SIZE,), jnp.float32, minval=-bound, maxval=bound
    )

    # --- small batch: grid-less whole-array path ---
    x = jax.random.normal(kx, (BATCH, INPUT_SIZE), jnp.float32)
    out = jax.block_until_ready(policy_network_forward(x, weight, bias))
    ref = jax.nn.softmax(x @ weight.T + bias, axis=-1)
    assert out.shape == (BATCH, OUTPUT_SIZE)
    assert jnp.allclose(out, ref, atol=1e-4, rtol=1e-4)
    assert jnp.allclose(jnp.sum(out, axis=-1), 1.0, atol=1e-5)

    # --- batched rollout: grid-tiled 'parallel' batch axis ---
    BIG = 2048
    xb = jax.random.normal(kx2, (BIG, INPUT_SIZE), jnp.float32)
    outb = jax.block_until_ready(
        policy_network_forward(xb, weight, bias, batch_tile=512)
    )
    refb = jax.nn.softmax(xb @ weight.T + bias, axis=-1)
    assert outb.shape == (BIG, OUTPUT_SIZE)
    assert jnp.allclose(outb, refb, atol=1e-4, rtol=1e-4)
    assert jnp.allclose(jnp.sum(outb, axis=-1), 1.0, atol=1e-5)

    print("KERNEL_OK")
</pallas_src>

<mosaic_0001>
module attributes {stable_mosaic.version = 11 : i64} {
  func.func @_policy_kernel(%arg0: memref<2x4xf32, #tpu.memory_space<smem>>, %arg1: memref<2xf32, #tpu.memory_space<smem>>, %arg2: memref<4x8xf32, #tpu.memory_space<vmem>>, %arg3: memref<2x8xf32, #tpu.memory_space<vmem>>) attributes {dimension_semantics = [], scalar_prefetch = 0 : i64, scratch_operands = 0 : i64, tpu.core_type = #tpu.core_type<tc>} {
    %c0 = arith.constant 0 : index
    %c0_0 = arith.constant 0 : index
    %0 = vector.load %arg2[%c0, %c0_0] : memref<4x8xf32, #tpu.memory_space<vmem>>, vector<1x8xf32>
    %c0_1 = arith.constant 0 : index
    %c0_2 = arith.constant 0 : index
    %1 = memref.load %arg0[%c0_1, %c0_2] : memref<2x4xf32, #tpu.memory_space<smem>>
    %2 = vector.broadcast %1 : f32 to vector<1x8xf32>
    %3 = arith.mulf %0, %2 : vector<1x8xf32>
    %c1 = arith.constant 1 : index
    %c0_3 = arith.constant 0 : index
    %4 = vector.load %arg2[%c1, %c0_3] : memref<4x8xf32, #tpu.memory_space<vmem>>, vector<1x8xf32>
    %c0_4 = arith.constant 0 : index
    %c1_5 = arith.constant 1 : index
    %5 = memref.load %arg0[%c0_4, %c1_5] : memref<2x4xf32, #tpu.memory_space<smem>>
    %6 = vector.broadcast %5 : f32 to vector<1x8xf32>
    %7 = arith.mulf %4, %6 : vector<1x8xf32>
    %8 = arith.addf %3, %7 : vector<1x8xf32>
    %c2 = arith.constant 2 : index
    %c0_6 = arith.constant 0 : index
    %9 = vector.load %arg2[%c2, %c0_6] : memref<4x8xf32, #tpu.memory_space<vmem>>, vector<1x8xf32>
    %c0_7 = arith.constant 0 : index
    %c2_8 = arith.constant 2 : index
    %10 = memref.load %arg0[%c0_7, %c2_8] : memref<2x4xf32, #tpu.memory_space<smem>>
    %11 = vector.broadcast %10 : f32 to vector<1x8xf32>
    %12 = arith.mulf %9, %11 : vector<1x8xf32>
    %13 = arith.addf %8, %12 : vector<1x8xf32>
    %c3 = arith.constant 3 : index
    %c0_9 = arith.constant 0 : index
    %14 = vector.load %arg2[%c3, %c0_9] : memref<4x8xf32, #tpu.memory_space<vmem>>, vector<1x8xf32>
    %c0_10 = arith.constant 0 : index
    %c3_11 = arith.constant 3 : index
    %15 = memref.load %arg0[%c0_10, %c3_11] : memref<2x4xf32, #tpu.memory_space<smem>>
    %16 = vector.broadcast %15 : f32 to vector<1x8xf32>
    %17 = arith.mulf %14, %16 : vector<1x8xf32>
    %18 = arith.addf %13, %17 : vector<1x8xf32>
    %c0_12 = arith.constant 0 : index
    %19 = memref.load %arg1[%c0_12] : memref<2xf32, #tpu.memory_space<smem>>
    %20 = vector.broadcast %19 : f32 to vector<1x8xf32>
    %21 = arith.addf %18, %20 : vector<1x8xf32>
    %c0_13 = arith.constant 0 : index
    %c0_14 = arith.constant 0 : index
    %22 = vector.load %arg2[%c0_13, %c0_14] : memref<4x8xf32, #tpu.memory_space<vmem>>, vector<1x8xf32>
    %c1_15 = arith.constant 1 : index
    %c0_16 = arith.constant 0 : index
    %23 = memref.load %arg0[%c1_15, %c0_16] : memref<2x4xf32, #tpu.memory_space<smem>>
    %24 = vector.broadcast %23 : f32 to vector<1x8xf32>
    %25 = arith.mulf %22, %24 : vector<1x8xf32>
    %c1_17 = arith.constant 1 : index
    %c0_18 = arith.constant 0 : index
    %26 = vector.load %arg2[%c1_17, %c0_18] : memref<4x8xf32, #tpu.memory_space<vmem>>, vector<1x8xf32>
    %c1_19 = arith.constant 1 : index
    %c1_20 = arith.constant 1 : index
    %27 = memref.load %arg0[%c1_19, %c1_20] : memref<2x4xf32, #tpu.memory_space<smem>>
    %28 = vector.broadcast %27 : f32 to vector<1x8xf32>
    %29 = arith.mulf %26, %28 : vector<1x8xf32>
    %30 = arith.addf %25, %29 : vector<1x8xf32>
    %c2_21 = arith.constant 2 : index
    %c0_22 = arith.constant 0 : index
    %31 = vector.load %arg2[%c2_21, %c0_22] : memref<4x8xf32, #tpu.memory_space<vmem>>, vector<1x8xf32>
    %c1_23 = arith.constant 1 : index
    %c2_24 = arith.constant 2 : index
    %32 = memref.load %arg0[%c1_23, %c2_24] : memref<2x4xf32, #tpu.memory_space<smem>>
    %33 = vector.broadcast %32 : f32 to vector<1x8xf32>
    %34 = arith.mulf %31, %33 : vector<1x8xf32>
    %35 = arith.addf %30, %34 : vector<1x8xf32>
    %c3_25 = arith.constant 3 : index
    %c0_26 = arith.constant 0 : index
    %36 = vector.load %arg2[%c3_25, %c0_26] : memref<4x8xf32, #tpu.memory_space<vmem>>, vector<1x8xf32>
    %c1_27 = arith.constant 1 : index
    %c3_28 = arith.constant 3 : index
    %37 = memref.load %arg0[%c1_27, %c3_28] : memref<2x4xf32, #tpu.memory_space<smem>>
    %38 = vector.broadcast %37 : f32 to vector<1x8xf32>
    %39 = arith.mulf %36, %38 : vector<1x8xf32>
    %40 = arith.addf %35, %39 : vector<1x8xf32>
    %c1_29 = arith.constant 1 : index
    %41 = memref.load %arg1[%c1_29] : memref<2xf32, #tpu.memory_space<smem>>
    %42 = vector.broadcast %41 : f32 to vector<1x8xf32>
    %43 = arith.addf %40, %42 : vector<1x8xf32>
    %44 = arith.subf %21, %43 : vector<1x8xf32>
    %45 = arith.negf %44 : vector<1x8xf32>
    %46 = math.exp %45 : vector<1x8xf32>
    %cst = arith.constant 1.000000e+00 : f32
    %47 = vector.broadcast %cst : f32 to vector<1x8xf32>
    %48 = arith.addf %47, %46 : vector<1x8xf32>
    %49 = arith.divf %47, %48 : vector<1x8xf32>
    %cst_30 = arith.constant 1.000000e+00 : f32
    %50 = vector.broadcast %cst_30 : f32 to vector<1x8xf32>
    %51 = arith.subf %50, %49 : vector<1x8xf32>
    %52 = tpu.concatenate %49, %51 in 0 : vector<1x8xf32>, vector<1x8xf32> -> vector<2x8xf32>
    %c0_31 = arith.constant 0 : index
    %c0_32 = arith.constant 0 : index
    %53 = vector.load %arg3[%c0_31, %c0_32] : memref<2x8xf32, #tpu.memory_space<vmem>>, vector<2x8xf32>
    tpu.vector_store %arg3[%c0_31, %c0_32], %52 {strides = array<i32>} : memref<2x8xf32, #tpu.memory_space<vmem>>, vector<2x8xf32>,
    return
  }
}

</mosaic_0001>

<bundles_post_ra>
// kernel: policy_network_forward.1
= control target key start
LH: loop header
LB: loop body
LE: loop exit
PB: predicated region body
PF: predicated region fallthrough
CT: control target
= control target key end

     0   :  { %8 = vsyncpa [#allocation5], 0  ;;  %s271_s0 = inlined_call_operand.vmem [shape: f32[2,4], index: 0, kind: input, shape index: {}]   ;;  %s272_s1 = inlined_call_operand.vmem [shape: f32[2], index: 1, kind: input, shape index: {}]   ;;  %s273_s2 = inlined_call_operand.hbm [shape: f32[4,8], index: 2, kind: input, shape index: {}]   ;;  %s274_s3 = inlined_call_operand.hbm [shape: f32[2,8], index: 3, kind: output, shape index: {}]  }
   0x1   :  { %9 = vsyncpa [#allocation7], 0 }
   0x2   :  { %10 = vsyncpa [#allocation3], 0 }
   0x3   :  { %11 = vsyncpa [#allocation4], 0  ;;  %s18_s14 = sshll.u32 %s271_s0, 4  ;;  %s28_s17 = sshll.u32 %s272_s1, 4  ;;  %s19_s14 = int_to_ptr.vmem [resolvable:$true] %s18_s14  ;;  %s29_s17 = int_to_ptr.vmem [resolvable:$true] %s28_s17 }
   0x4   :  { %s141_s18 = scalar_lea.vmem %s19_s14, 32  ;;  %p146_p1 = scmp.lt.s32.totalorder %s19_s14, %s19_s14 }
   0x5   :  { %p142_p0 = scmp.ne.s32.totalorder %s19_s14, %s141_s18  ;;  %p147_p2 = scmp.lt.s32.totalorder %s141_s18, %s141_s18 }
   0x7   :  { %p148_p3 = por %p147_p2, %p146_p1 }
   0x9   :  { %p149_p4 = pnand %p148_p3, %p142_p0 }
   0xb   :  { %152 = shalt.err (!%p149_p4)
}
   0xc   :  { %s217_s19 = smov [#allocation2]   ;;  %s153_s20 = scalar_lea.vmem %s29_s17, 16 }
   0xd   :  { %21 = dma.vmem_to_smem %s19_s14, 32, %s217_s19, [#allocation5]  }
   0xe   :  { %p154_p5 = scmp.ne.s32.totalorder %s29_s17, %s153_s20  ;;  %p158_p6 = scmp.lt.s32.totalorder %s29_s17, %s29_s17 }
   0xf   :  { %p159_p7 = scmp.lt.s32.totalorder %s153_s20, %s153_s20 }
  0x11   :  { %p160_p8 = por %p159_p7, %p158_p6 }
  0x13   :  { %p161_p9 = pnand %p160_p8, %p154_p5 }
  0x15   :  { %164 = shalt.err (!%p161_p9)
}
  0x16   :  { %s218_s0 = smov [#allocation6]   ;;  %s219_s1 = smov [#allocation8]  }
  0x17   :  { %31 = dma.vmem_to_smem %s29_s17, 16, %s218_s0, [#allocation7]  }
  0x18   :  { %s38_s21 = sshll.u32 %s219_s1, 4  ;;  %s165_s24 = scalar_lea.hbm %s273_s2, 64  ;;  %s39_s21 = int_to_ptr.vmem [resolvable:$true] %s38_s21 }
  0x19   :  { %p166_p10 = scmp.ne.s32.totalorder %s273_s2, %s165_s24  ;;  %p169_p11 = scmp.lt.u32.totalorder %s165_s24, %s273_s2 }
  0x1b   :  { %p171_p12 = pnand %p169_p11, %p166_p10 }
  0x1d   :  { %174 = shalt.err (!%p171_p12)
}
  0x1e   :  { %s175_s29 = scalar_lea.vmem %s39_s21, 64  ;;  %p180_p0 = scmp.lt.s32.totalorder %s39_s21, %s39_s21 }
  0x1f   :  { %p176_p13 = scmp.ne.s32.totalorder %s39_s21, %s175_s29  ;;  %p181_p1 = scmp.lt.s32.totalorder %s175_s29, %s175_s29 }
  0x21   :  { %p182_p2 = por %p181_p1, %p180_p0 }
  0x23   :  { %p183_p3 = pnand %p182_p2, %p176_p13 }
  0x25   :  { %186 = shalt.err (!%p183_p3)
}
  0x26   :  { %41 = dma.hbm_to_vmem [thread:$0]  %s273_s2, 64, %s39_s21, [#allocation3]  }
  0x27   :  { %209 = dma.done.wait [#allocation5], 32  }
  0x28   :  { %210 = vsyncadd [#allocation5], 4294967264 }
  0x29   :  { %211 = dma.done.wait [#allocation7], 16  }
  0x2a   :  { %212 = vsyncadd [#allocation7], 4294967280 }
  0x2b   :  { %213 = dma.done.wait [#allocation3], 64  }
  0x2c   :  { %214 = vsyncadd [#allocation3], 4294967232 }
  0x2d   :  { %51 = sfence }
  0x2e   :  { %s53_s5 = sld [smem:[#allocation2]]  ;;  %s124_s6 = sld [smem:[#allocation2 + $0x1]]  ;;  %v52_v0 = vld [vmem:[#allocation8] sm:$0x1]  ;;  %v56_v1 = vld [vmem:[#allocation8 + $0x1] sm:$0x1] }
  0x2f   :  { %s125_s7 = sld [smem:[#allocation2 + $0x2]]  ;;  %s126_s8 = sld [smem:[#allocation2 + $0x3]]  ;;  %v61_v2 = vld [vmem:[#allocation8 + $0x2] sm:$0x1]  ;;  %v66_v4 = vld [vmem:[#allocation8 + $0x3] sm:$0x1] }
  0x30   :  { %s127_s9 = sld [smem:[#allocation2 + $0x80]]  ;;  %s128_s10 = sld [smem:[#allocation2 + $0x81]]  ;;  %vm103_vm0 = vcmask 1040384   ;;  %vm105_vm1 = vcmask 58368  }
  0x31   :  { %s129_s11 = sld [smem:[#allocation2 + $0x82]]  ;;  %s130_s12 = sld [smem:[#allocation2 + $0x83]] }
  0x32   :  { %s71_s13 = sld [smem:[#allocation6]]  ;;  %s131_s2 = sld [smem:[#allocation6 + $0x1]] }
  0x33   :  { %s220_s14 = smov [#allocation9]  }
  0x34   :  { %v54_v3 = vstv %s53_s5  ;;  %v58_v6 = vstv %s124_s6  ;;  %s113_s15 = sshll.u32 %s220_s14, 4  ;;  %s114_s15 = int_to_ptr.vmem [resolvable:$true] %s113_s15 }
  0x35   :  { %v55_v5 = vmul.f32 %v54_v3, %v52_v0  ;;  %v63_v7 = vstv %s125_s7  ;;  %v59_v8 = vmul.f32 %v58_v6, %v56_v1  ;;  %v68_v10 = vstv %s126_s8  ;;  %s187_s16 = scalar_lea.vmem %s114_s15, 32  ;;  %p192_p5 = scmp.lt.s32.totalorder %s114_s15, %s114_s15 }
  0x36   :  { %v64_v9 = vmul.f32 %v63_v7, %v61_v2  ;;  %v69_v11 = vmul.f32 %v68_v10, %v66_v4  ;;  %v75_v12 = vstv %s127_s9  ;;  %v78_v13 = vstv %s128_s10  ;;  %p188_p4 = scmp.ne.s32.totalorder %s114_s15, %s187_s16  ;;  %p193_p6 = scmp.lt.s32.totalorder %s187_s16, %s187_s16 }
  0x37   :  { %v60_v14 = vadd.f32 %v59_v8, %v55_v5  ;;  %v76_v15 = vmul.f32 %v75_v12, %v52_v0  ;;  %v79_v16 = vmul.f32 %v78_v13, %v56_v1  ;;  %v82_v17 = vstv %s129_s11 }
  0x38   :  { %v83_v18 = vmul.f32 %v82_v17, %v61_v2  ;;  %v86_v19 = vstv %s130_s12  ;;  %v72_v23 = vstv %s71_s13  ;;  %v90_v26 = vstv %s131_s2  ;;  %p194_p7 = por %p193_p6, %p192_p5 }
  0x39   :  { %v65_v20 = vadd.f32 %v64_v9, %v60_v14  ;;  %v80_v21 = vadd.f32 %v79_v16, %v76_v15  ;;  %v87_v22 = vmul.f32 %v86_v19, %v66_v4 }
  0x3a   :  { %p195_p8 = pnand %p194_p7, %p188_p4 }
  0x3b   :  { %v70_v24 = vadd.f32 %v69_v11, %v65_v20  ;;  %v84_v25 = vadd.f32 %v83_v18, %v80_v21 }
  0x3d   :  { %v73_v27 = vadd.f32 %v72_v23, %v70_v24  ;;  %v88_v28 = vadd.f32 %v87_v22, %v84_v25 }
  0x3f   :  { %v91_v29 = vadd.f32 %v90_v26, %v88_v28 }
  0x41   :  { %v92_v30 = vsub.f32 %v73_v27, %v91_v29 }
  0x43   :  { %v132_v31 = vmul.f32 -1.442695, %v92_v30 }
  0x45   :  { %137 = vpow2.f32 %v132_v31 }
  0x4f   :  { %v138_v32 = vpop.eup %137 }
  0x50   :  { %v96_v33 = vadd.f32 1.0, %v138_v32 }
  0x52   :  { %139 = vrcp.f32 %v96_v33 }
  0x5c   :  { %v140_v34 = vpop.eup %139 }
  0x5d   :  { %v99_v35 = vsub.f32 1.0, %v140_v34 }
  0x5f   :  { %v101_v36 = vrot.slane %v99_v35, 7 }
  0x61   :  { %v104_v37 = vsel %vm103_vm0, %v140_v34, %v101_v36 }
  0x62   :  { %106 = vst.msk [vmem:[#allocation9] sm:$0x3] %vm105_vm1, %v104_v37 }
  0x63   :  { %198 = shalt.err (!%p195_p8)
}
  0x64   :  { %s199_s19 = scalar_lea.hbm %s274_s3, 32 }
  0x65   :  { %p200_p9 = scmp.ne.s32.totalorder %s274_s3, %s199_s19  ;;  %p203_p10 = scmp.lt.u32.totalorder %s199_s19, %s274_s3 }
  0x67   :  { %p205_p11 = pnand %p203_p10, %p200_p9 }
  0x69   :  { %208 = shalt.err (!%p205_p11)
}
  0x6a   :  { %116 = dma.vmem_to_hbm [thread:$0]  %s114_s15, 32, %s274_s3, [#allocation4]  }
  0x6b   :  { %215 = dma.done.wait [#allocation4], 32  }
  0x6c   :  { %216 = vsyncadd [#allocation4], 4294967264 }
  0x6d   :  { %120 = vsyncpa [#allocation3], 1 }
  0x6e   :  { %121 = vsyncpa [#allocation4], 1 }
  0x6f   :  { %122 = vsyncpa [#allocation5], 1 }
  0x70   :  { %123 = vsyncpa [#allocation7], 1 }

</bundles_post_ra>
